<compile_context>
chip_gen: v7x
topology: tpu7x:2x2x1
jax: 0.10.0
libtpu: 0.0.40
codegen_flags: <defaults>
</compile_context>

<pallas_src>
import functools

import jax
import jax.numpy as jnp
from jax.experimental import pallas as pl
from jax.experimental.pallas import tpu as pltpu


def _patch_proj_kernel(p_ref, w_ref, b_ref, o_ref):
    # (tm, K) @ (K, E) on the MXU, f32 accumulation, + bias, store f32.
    acc = jnp.dot(p_ref[...], w_ref[...], preferred_element_type=jnp.float32)
    o_ref[...] = (acc + b_ref[...]).astype(o_ref.dtype)


def _round_up(x, m):
    return (x + m - 1) // m * m


def _pick_tm(M, cap=1024):
    """Row-tile size: <= cap, multiple of 16 (bf16 sublane packing).

    Prefer a tile that divides M exactly (no wasted partial block, even grid
    split across v7x's two TensorCores), but never shrink below cap/2 for it —
    a single masked partial block is cheaper than small tiles everywhere.
    """
    tm = min(cap, _round_up(M, 16))
    if M % tm:
        for cand in range(tm, max(tm // 2, 16) - 1, -16):
            if M % cand == 0:
                return cand
    return tm


def _patch_proj(patches, w, b, *, tm):
    """patches: (M, K) bf16, w: (K, E) bf16, b: (1, E) f32 -> (M, E) f32."""
    M, K = patches.shape
    _, E = w.shape
    grid = (pl.cdiv(M, tm),)

    # Working set: double-buffered streamed patches + output, resident W/bias.
    ws = 2 * tm * K * 2 + 2 * tm * E * 4 + 2 * K * E * 2 + 2 * E * 4
    vmem_limit = int(min(max(ws + (8 << 20), 32 << 20), 48 << 20))

    cost = pl.CostEstimate(
        flops=2 * M * K * E,
        transcendentals=0,
        bytes_accessed=M * K * 2 + K * E * 2 + E * 4 + M * E * 4,
    )

    return pl.pallas_call(
        _patch_proj_kernel,
        out_shape=jax.ShapeDtypeStruct((M, E), jnp.float32),
        grid_spec=pltpu.PrefetchScalarGridSpec(
            num_scalar_prefetch=0,
            grid=grid,
            in_specs=[
                pl.BlockSpec((tm, K), lambda i: (i, 0)),  # streamed patch rows
                pl.BlockSpec((K, E), lambda i: (0, 0)),   # weight: VMEM-resident
                pl.BlockSpec((1, E), lambda i: (0, 0)),   # bias:   VMEM-resident
            ],
            out_specs=pl.BlockSpec((tm, E), lambda i: (i, 0)),  # lane-dense
        ),
        compiler_params=pltpu.CompilerParams(
            dimension_semantics=("parallel",),
            vmem_limit_bytes=vmem_limit,
            # Allow XLA to fuse the patchify cast/reshape/transpose producer
            # into the patches operand instead of materializing an extra pass.
            allow_input_fusion=[True, False, False],
        ),
        cost_estimate=cost,
    )(patches, w, b)


def _forward(x, w_kE, b_1E, *, tubelet_size, patch_size):
    B, C, T, H, W = x.shape
    tt, p = tubelet_size, patch_size
    assert T % tt == 0 and H % p == 0 and W % p == 0
    Tp, Hp, Wp = T // tt, H // p, W // p
    K, E = w_kE.shape
    assert K == C * tt * p * p
    M = B * Tp * Hp * Wp

    # Patchify: cast to bf16 BEFORE the transpose (halves the layout pass's
    # HBM traffic and feeds the MXU its native dtype).  Under jit the cast,
    # reshape and transpose fuse into one producer which allow_input_fusion
    # lets XLA fold into the pallas_call input.
    # TODO(synk): restructure the grid over (b, t', h') with a BlockSpec on
    # the raw (B, C, T, H, W) tensor and do the (C,tt,p,p)->K flatten in VMEM
    # to drop the patches intermediate entirely; deferred because the
    # in-kernel im2col relayout risks becoming XLU/relayout-bound.
    xb = x.astype(jnp.bfloat16)
    xp = xb.reshape(B, C, Tp, tt, Hp, p, Wp, p)
    xp = jnp.transpose(xp, (0, 2, 4, 6, 1, 3, 5, 7))
    patches = xp.reshape(M, K)

    tm = _pick_tm(M)
    out = _patch_proj(patches, w_kE, b_1E, tm=tm)   # (M, E) f32
    return out.reshape(B, Tp * Hp * Wp, E)          # (B, N, E)


class PatchEmbed3D:
    """JAX/Pallas equivalent of the PyTorch PatchEmbed3D module."""

    def __init__(self, patch_size=16, tubelet_size=2, in_chans=3,
                 embed_dim=768, *, key=None):
        self.patch_size = patch_size
        self.tubelet_size = tubelet_size
        self.in_chans = in_chans
        self.embed_dim = embed_dim

        key = jax.random.PRNGKey(0) if key is None else key
        kw, kb = jax.random.split(key)
        # Conv3d weight layout: (out, in, kt, kh, kw); bias: (out,)
        fan_in = in_chans * tubelet_size * patch_size * patch_size
        scale = 1.0 / jnp.sqrt(fan_in)
        self.weight = (jax.random.uniform(
            kw, (embed_dim, in_chans, tubelet_size, patch_size, patch_size),
            dtype=jnp.float32, minval=-1.0, maxval=1.0) * scale)
        self.bias = (jax.random.uniform(
            kb, (embed_dim,), dtype=jnp.float32, minval=-1.0, maxval=1.0)
            * scale)

        # GEMM-ready parameters cached once (no per-forward transpose/cast):
        # (K, E) bf16 weight with K ordered as (c, dt, dh, dw), f32 (1, E) bias.
        K = fan_in
        self.w_kE = jnp.asarray(self.weight.reshape(embed_dim, K).T,
                                dtype=jnp.bfloat16)
        self.b_1E = self.bias.reshape(1, embed_dim)

        self._fwd = jax.jit(functools.partial(
            _forward, tubelet_size=tubelet_size, patch_size=patch_size))

    def __call__(self, x):
        # x: (B, C, T, H, W) float32 (NCTHW, as in PyTorch)
        assert x.shape[1] == self.in_chans
        return self._fwd(x, self.w_kE, self.b_1E)


if __name__ == "__main__":
    # Small, Conv3d-compatible shapes.
    B, C, T, H, W = 2, 4, 4, 16, 16
    patch_size, tubelet_size, embed_dim = 4, 2, 128

    key = jax.random.PRNGKey(0)
    kx, kp = jax.random.split(key)
    x = jax.random.normal(kx, (B, C, T, H, W), dtype=jnp.float32)

    mod = PatchEmbed3D(patch_size=patch_size, tubelet_size=tubelet_size,
                       in_chans=C, embed_dim=embed_dim, key=kp)

    out = jax.block_until_ready(mod(x))

    # Reference: plain-JAX conv3d (kernel == stride) with the same numerics
    # as the kernel (bf16 inputs, f32 accumulation).
    ref = jax.lax.conv_general_dilated(
        x.astype(jnp.bfloat16), mod.weight.astype(jnp.bfloat16),
        window_strides=(tubelet_size, patch_size, patch_size),
        padding="VALID",
        dimension_numbers=("NCDHW", "OIDHW", "NCDHW"),
        preferred_element_type=jnp.float32,
    )
    ref = ref + mod.bias.reshape(1, embed_dim, 1, 1, 1)
    Bt, Et, Tt, Ht, Wt = ref.shape
    ref = ref.reshape(Bt, Et, Tt * Ht * Wt).transpose(0, 2, 1)

    N = (T // tubelet_size) * (H // patch_size) * (W // patch_size)
    assert out.shape == (B, N, embed_dim)
    assert jnp.allclose(out, ref, atol=2e-2, rtol=2e-2)
    print("KERNEL_OK")
</pallas_src>

<mosaic_0001>
module attributes {stable_mosaic.version = 11 : i64} {
  func.func @_patch_proj_kernel(%arg0: i32, %arg1: memref<64x128xbf16, #tpu.memory_space<vmem>>, %arg2: memref<128x128xbf16, #tpu.memory_space<vmem>>, %arg3: memref<1x128xf32, #tpu.memory_space<vmem>>, %arg4: memref<64x128xf32, #tpu.memory_space<vmem>>) attributes {dimension_semantics = [#tpu.dimension_semantics<parallel>], iteration_bounds = array<i64: 1>, scalar_prefetch = 0 : i64, scratch_operands = 0 : i64, tpu.core_type = #tpu.core_type<tc>, window_params = [{transform_indices = @transform_0, window_bounds = array<i64: 64, 128>}, {pipeline_mode = #tpu.pipeline_mode<synchronous>, transform_indices = @transform_1, window_bounds = array<i64: 128, 128>}, {pipeline_mode = #tpu.pipeline_mode<synchronous>, transform_indices = @transform_2, window_bounds = array<i64: 1, 128>}, {transform_indices = @transform_3, window_bounds = array<i64: 64, 128>}]} {
    %c0 = arith.constant 0 : index
    %c0_0 = arith.constant 0 : index
    %0 = vector.load %arg1[%c0, %c0_0] : memref<64x128xbf16, #tpu.memory_space<vmem>>, vector<64x128xbf16>
    %c0_1 = arith.constant 0 : index
    %c0_2 = arith.constant 0 : index
    %1 = vector.load %arg2[%c0_1, %c0_2] : memref<128x128xbf16, #tpu.memory_space<vmem>>, vector<128x128xbf16>
    %cst = arith.constant dense<0.000000e+00> : vector<64x128xf32>
    %2 = tpu.matmul %0, %1, %cst {dimension_numbers = #tpu.dot_dimension_numbers<[1], [0], [0], [1], [0, 0, 1, 1], [], []>} : vector<64x128xbf16>, vector<128x128xbf16>, vector<64x128xf32> -> vector<64x128xf32>
    %c0_3 = arith.constant 0 : index
    %c0_4 = arith.constant 0 : index
    %3 = vector.load %arg3[%c0_3, %c0_4] : memref<1x128xf32, #tpu.memory_space<vmem>>, vector<1x128xf32>
    %4 = vector.broadcast %3 : vector<1x128xf32> to vector<64x128xf32>
    %5 = arith.addf %2, %4 : vector<64x128xf32>
    %c0_5 = arith.constant 0 : index
    %c0_6 = arith.constant 0 : index
    %6 = vector.load %arg4[%c0_5, %c0_6] : memref<64x128xf32, #tpu.memory_space<vmem>>, vector<64x128xf32>
    tpu.vector_store %arg4[%c0_5, %c0_6], %5 {strides = array<i32>} : memref<64x128xf32, #tpu.memory_space<vmem>>, vector<64x128xf32>,
    return
  }
  func.func @transform_0(%arg0: i32) -> (i32, i32) {
    %c0_i32 = arith.constant 0 : i32
    %c0_i32_0 = arith.constant 0 : i32
    return %arg0, %c0_i32 : i32, i32
  }
  func.func @transform_1(%arg0: i32) -> (i32, i32) {
    %c0_i32 = arith.constant 0 : i32
    %c0_i32_0 = arith.constant 0 : i32
    %c0_i32_1 = arith.constant 0 : i32
    return %c0_i32, %c0_i32_0 : i32, i32
  }
  func.func @transform_2(%arg0: i32) -> (i32, i32) {
    %c0_i32 = arith.constant 0 : i32
    %c0_i32_0 = arith.constant 0 : i32
    %c0_i32_1 = arith.constant 0 : i32
    return %c0_i32, %c0_i32_0 : i32, i32
  }
  func.func @transform_3(%arg0: i32) -> (i32, i32) {
    %c0_i32 = arith.constant 0 : i32
    %c0_i32_0 = arith.constant 0 : i32
    return %arg0, %c0_i32 : i32, i32
  }
}

</mosaic_0001>

<bundles_post_ra>
// kernel: _forward.1
= control target key start
LH: loop header
LB: loop body
LE: loop exit
PB: predicated region body
PF: predicated region fallthrough
CT: control target
= control target key end

     0   :  { %s386_s0 = inlined_call_operand.vmem [shape: bf16[64,128], index: 0, kind: input, shape index: {}]   ;;  %s387_s1 = inlined_call_operand.vmem [shape: bf16[128,128], index: 1, kind: input, shape index: {}]   ;;  %s388_s2 = inlined_call_operand.vmem [shape: f32[1,128], index: 2, kind: input, shape index: {}]   ;;  %s389_s3 = inlined_call_operand.hbm [shape: f32[64,128], index: 3, kind: output, shape index: {}]  }
   0x1   :  { %v276_v0 = vld [vmem:[%s387_s1] sm:$0xff]   ;;  %v277_v1 = vld [vmem:[%s387_s1 + $0x8] sm:$0xff]   ;;  %v278_v2 = vld [vmem:[%s387_s1 + $0x10] sm:$0xff]  }
   0x2   :  { %233 = vmatprep.subr.bf16.mxu0 %v276_v0  ;;  %257 = vmatprep.subr.bf16.mxu1 %v276_v0  ;;  %v279_v3 = vld [vmem:[%s387_s1 + $0x18] sm:$0xff]   ;;  %v284_v4 = vld [vmem:[%s386_s0] sm:$0xff]   ;;  %v285_v5 = vld [vmem:[%s386_s0 + $0x10] sm:$0xff]  }
   0x3   :  { %234 = vmatpush3.bf16.msra.mxu0 %v276_v0  ;;  %265 = vmatpush3.bf16.msra.mxu1 %v276_v0  ;;  %v280_v6 = vld [vmem:[%s387_s1 + $0x20] sm:$0xff]  }
   0x4   :  { %235 = vmatprep.subr.bf16.mxu0 %v277_v1  ;;  %258 = vmatprep.subr.bf16.mxu1 %v277_v1 }
   0x5   :  { %249 = vmatprep.mubr.bf16.mxu0 %v284_v4 }
   0x7   :  { %236 = vmatpush3.bf16.msra.mxu0 %v277_v1  ;;  %266 = vmatpush3.bf16.msra.mxu1 %v277_v1 }
   0x8   :  { %237 = vmatprep.subr.bf16.mxu0 %v278_v2  ;;  %259 = vmatprep.subr.bf16.mxu1 %v278_v2 }
   0xb   :  { %238 = vmatpush3.bf16.msra.mxu0 %v278_v2  ;;  %267 = vmatpush3.bf16.msra.mxu1 %v278_v2 }
   0xc   :  { %239 = vmatprep.subr.bf16.mxu0 %v279_v3  ;;  %260 = vmatprep.subr.bf16.mxu1 %v279_v3 }
   0xd   :  { %8 = vsyncpa [#allocation3], 0  ;;  %253 = vmatprep.mubr.bf16.mxu1 %v285_v5  ;;  %v281_v7 = vld [vmem:[%s387_s1 + $0x28] sm:$0xff]   ;;  %v282_v8 = vld [vmem:[%s387_s1 + $0x30] sm:$0xff]  }
   0xe   :  { %v283_v9 = vld [vmem:[%s387_s1 + $0x38] sm:$0xff]   ;;  %v286_v10 = vld [vmem:[%s386_s0 + $0x8] sm:$0xff]   ;;  %v208_v12 = vld [vmem:[%s388_s2] ss:$0 sm:$0xff]  ;;  %s312_s1 = smov [#allocation2]  }
   0xf   :  { %240 = vmatpush3.bf16.msra.mxu0 %v279_v3  ;;  %268 = vmatpush3.bf16.msra.mxu1 %v279_v3  ;;  %v287_v11 = vld [vmem:[%s386_s0 + $0x18] sm:$0xff]   ;;  %s197_s11 = sshll.u32 %s312_s1, 4  ;;  %s198_s11 = int_to_ptr.vmem [resolvable:$true] %s197_s11 }
  0x10   :  { %241 = vmatprep.subr.bf16.mxu0 %v280_v6  ;;  %261 = vmatprep.subr.bf16.mxu1 %v280_v6  ;;  %s288_s0 = scalar_lea.vmem %s198_s11, 1024  ;;  %p293_p1 = scmp.lt.s32.totalorder %s198_s11, %s198_s11 }
  0x11   :  { %p289_p0 = scmp.ne.s32.totalorder %s198_s11, %s288_s0  ;;  %p294_p2 = scmp.lt.s32.totalorder %s288_s0, %s288_s0 }
  0x13   :  { %242 = vmatpush3.bf16.msra.mxu0 %v280_v6  ;;  %269 = vmatpush3.bf16.msra.mxu1 %v280_v6  ;;  %p295_p3 = por %p294_p2, %p293_p1 }
  0x14   :  { %243 = vmatprep.subr.bf16.mxu0 %v281_v7  ;;  %262 = vmatprep.subr.bf16.mxu1 %v281_v7 }
  0x15   :  { %p296_p4 = pnand %p295_p3, %p289_p0 }
  0x17   :  { %244 = vmatpush3.bf16.msra.mxu0 %v281_v7  ;;  %270 = vmatpush3.bf16.msra.mxu1 %v281_v7 }
  0x18   :  { %245 = vmatprep.subr.bf16.mxu0 %v282_v8  ;;  %263 = vmatprep.subr.bf16.mxu1 %v282_v8 }
  0x1b   :  { %246 = vmatpush3.bf16.msra.mxu0 %v282_v8  ;;  %271 = vmatpush3.bf16.msra.mxu1 %v282_v8 }
  0x1c   :  { %247 = vmatprep.subr.bf16.mxu0 %v283_v9  ;;  %264 = vmatprep.subr.bf16.mxu1 %v283_v9 }
  0x1f   :  { %248 = vmatpush3.bf16.msra.mxu0 %v283_v9  ;;  %272 = vmatpush3.bf16.msra.mxu1 %v283_v9 }
  0x22   :  { %250 = vmatmul.mubr.bf16.vlgmr.msra.gmra.mrb[0].mxu0 %v286_v10  ;;  %254 = vmatmul.mubr.bf16.vlgmr.msra.gmra.mrb[0].mxu1 %v287_v11 }
  0xf5   :  { %v251_v13 = vpop.f32.mrb[0].mxu0  ;;  %v255_v14 = vpop.f32.mrb[0].mxu1 }
  0xf6   :  { %v162_v15 = vadd.f32 %v251_v13, %v208_v12  ;;  %v178_v16 = vadd.f32 %v255_v14, %v208_v12  ;;  %v153_v17 = vpop.f32.mrb[1].mxu0  ;;  %v169_v18 = vpop.f32.mrb[1].mxu1 }
  0xf7   :  { %v154_v19 = vadd.f32 %v208_v12, %v153_v17  ;;  %v170_v20 = vadd.f32 %v208_v12, %v169_v18  ;;  %v252_v21 = vpop.f32.mrb[2].mxu0  ;;  %v256_v22 = vpop.f32.mrb[2].mxu1 }
  0xf8   :  { %186 = vst [vmem:[#allocation2 + $0x10] sm:$0xff] %v162_v15  ;;  %190 = vst [vmem:[#allocation2 + $0x30] sm:$0xff] %v178_v16  ;;  %v165_v23 = vadd.f32 %v252_v21, %v208_v12  ;;  %v181_v24 = vadd.f32 %v256_v22, %v208_v12  ;;  %v156_v25 = vpop.f32.mrb[3].mxu0  ;;  %v172_v26 = vpop.f32.mrb[3].mxu1 }
  0xf9   :  { %184 = vst [vmem:[#allocation2] sm:$0xff] %v154_v19  ;;  %188 = vst [vmem:[#allocation2 + $0x20] sm:$0xff] %v170_v20  ;;  %v157_v27 = vadd.f32 %v208_v12, %v156_v25  ;;  %v173_v28 = vadd.f32 %v208_v12, %v172_v26 }
  0xfa   :  { %187 = vst [vmem:[#allocation2 + $0x18] sm:$0xff] %v165_v23  ;;  %191 = vst [vmem:[#allocation2 + $0x38] sm:$0xff] %v181_v24 }
  0xfb   :  { %185 = vst [vmem:[#allocation2 + $0x8] sm:$0xff] %v157_v27  ;;  %189 = vst [vmem:[#allocation2 + $0x28] sm:$0xff] %v173_v28 }
  0xfc   :  { %299 = shalt.err (!%p296_p4)
}
  0xfd   :  { %s300_s13 = scalar_lea.hbm %s389_s3, 1024 }
  0xfe   :  { %p301_p5 = scmp.ne.s32.totalorder %s389_s3, %s300_s13  ;;  %p304_p6 = scmp.lt.u32.totalorder %s300_s13, %s389_s3 }
 0x100   :  { %p306_p7 = pnand %p304_p6, %p301_p5 }
 0x102   :  { %309 = shalt.err (!%p306_p7)
}
 0x103   :  { %s313_s18 = smov 128   ;;  %s314_s19 = smov 8  }
 0x104   :  { %203 = dma.vmem_to_hbm [thread:$0]  %s198_s11, 1024, %s389_s3, [#allocation3], %s313_s18, %s313_s18, %s314_s19  }
 0x105   :  { %310 = dma.done.wait [#allocation3], 1024  }
 0x106   :  { %311 = vsyncadd [#allocation3], 4294966272 }
 0x107   :  { %207 = vsyncpa [#allocation3], 1 }

</bundles_post_ra>
